<compile_context>
chip_gen: v7x
topology: tpu7x:2x2x1
jax: 0.10.0
libtpu: 0.0.40
codegen_flags: <defaults>
</compile_context>

<pallas_src>
import jax
import jax.numpy as jnp
from jax.experimental import pallas as pl
from jax.experimental.pallas import tpu as pltpu


def _logish_kernel(x_ref, o_ref):
    xf = x_ref[...].astype(jnp.float32)
    y = xf * jnp.log1p(jax.nn.sigmoid(xf))
    o_ref[...] = y.astype(o_ref.dtype)


_LANE = 128
_TARGET_BLOCK_BYTES = 2 * 1024 * 1024  # ~2 MiB/block; x2 dbl-buf x2 in/out = 8 MiB VMEM


def logish(x):
    """Elementwise Logish via a Pallas TPU kernel. Works for any input shape."""
    orig_shape = x.shape
    orig_dtype = x.dtype
    n = x.size
    if n == 0:
        return x

    # Widest lane-dense width that divides n exactly (no pad copy in the
    # common case); minimal pad to a 128-lane boundary only if truly ragged.
    width = None
    for w in (1024, 512, 256, _LANE):
        if n % w == 0:
            width = w
            break

    flat = jnp.ravel(x)
    if width is None:
        width = _LANE
        n_pad = pl.cdiv(n, width) * width
        flat = jnp.pad(flat, (0, n_pad - n))  # logish(0) == 0; tail sliced off anyway
    else:
        n_pad = n

    rows = n_pad // width
    dtype_bytes = jnp.dtype(orig_dtype).itemsize

    # ~2 MiB row-blocks; row count a multiple of 32 so f32(8)/bf16(16)/int8(32)
    # sublane packing is never half-empty.
    br_target = max(32, (_TARGET_BLOCK_BYTES // (width * dtype_bytes)) // 32 * 32)
    if rows <= br_target:
        br = rows               # single full-coverage block (always legal)
    else:
        br = br_target          # ragged last block handled by cdiv grid

    grid = (pl.cdiv(rows, br),)
    x2d = flat.reshape(rows, width)

    out2d = pl.pallas_call(
        _logish_kernel,
        out_shape=jax.ShapeDtypeStruct((rows, width), orig_dtype),
        grid_spec=pltpu.PrefetchScalarGridSpec(
            num_scalar_prefetch=0,
            grid=grid,
            in_specs=[pl.BlockSpec((br, width), lambda i: (i, 0))],
            out_specs=pl.BlockSpec((br, width), lambda i: (i, 0)),
        ),
        compiler_params=pltpu.CompilerParams(
            dimension_semantics=("parallel",),
        ),
    )(x2d)

    out_flat = out2d.reshape(-1)
    if n_pad != n:
        out_flat = out_flat[:n]
    return out_flat.reshape(orig_shape)


def logish_ref(x):
    xf = x.astype(jnp.float32)
    return (xf * jnp.log(1.0 + jax.nn.sigmoid(xf))).astype(x.dtype)


if __name__ == "__main__":
    key = jax.random.PRNGKey(0)

    # small NCHW-like input consistent with how Logish is used after conv/linear layers
    x = jax.random.normal(key, (2, 4, 16, 16), dtype=jnp.float32)
    y = jax.block_until_ready(logish(x))
    y_ref = logish_ref(x)
    assert y.shape == x.shape and y.dtype == x.dtype
    assert jnp.allclose(y, y_ref, atol=1e-5, rtol=1e-5)

    # ragged size (not a multiple of 128) exercises the minimal-pad path
    x2 = jax.random.normal(jax.random.PRNGKey(1), (2, 3, 7, 11), dtype=jnp.float32)
    y2 = jax.block_until_ready(logish(x2))
    assert y2.shape == x2.shape and y2.dtype == x2.dtype
    assert jnp.allclose(y2, logish_ref(x2), atol=1e-5, rtol=1e-5)

    print("KERNEL_OK")
</pallas_src>

<mosaic_0001>
module attributes {stable_mosaic.version = 11 : i64} {
  func.func @_logish_kernel(%arg0: i32, %arg1: memref<2x1024xf32, #tpu.memory_space<vmem>>, %arg2: memref<2x1024xf32, #tpu.memory_space<vmem>>) attributes {dimension_semantics = [#tpu.dimension_semantics<parallel>], iteration_bounds = array<i64: 1>, scalar_prefetch = 0 : i64, scratch_operands = 0 : i64, tpu.core_type = #tpu.core_type<tc>, window_params = [{transform_indices = @transform_0, window_bounds = array<i64: 2, 1024>}, {transform_indices = @transform_1, window_bounds = array<i64: 2, 1024>}]} {
    %c0 = arith.constant 0 : index
    %c0_0 = arith.constant 0 : index
    %0 = vector.load %arg1[%c0, %c0_0] : memref<2x1024xf32, #tpu.memory_space<vmem>>, vector<2x1024xf32>
    %1 = arith.negf %0 : vector<2x1024xf32>
    %2 = math.exp %1 : vector<2x1024xf32>
    %cst = arith.constant 1.000000e+00 : f32
    %3 = vector.broadcast %cst : f32 to vector<2x1024xf32>
    %4 = arith.addf %3, %2 : vector<2x1024xf32>
    %5 = arith.divf %3, %4 : vector<2x1024xf32>
    %6 = math.log1p %5 : vector<2x1024xf32>
    %7 = arith.mulf %0, %6 : vector<2x1024xf32>
    %c0_1 = arith.constant 0 : index
    %c0_2 = arith.constant 0 : index
    %8 = vector.load %arg2[%c0_1, %c0_2] : memref<2x1024xf32, #tpu.memory_space<vmem>>, vector<2x1024xf32>
    tpu.vector_store %arg2[%c0_1, %c0_2], %7 {strides = array<i32>} : memref<2x1024xf32, #tpu.memory_space<vmem>>, vector<2x1024xf32>,
    return
  }
  func.func @transform_0(%arg0: i32) -> (i32, i32) {
    %c0_i32 = arith.constant 0 : i32
    %c0_i32_0 = arith.constant 0 : i32
    return %arg0, %c0_i32 : i32, i32
  }
  func.func @transform_1(%arg0: i32) -> (i32, i32) {
    %c0_i32 = arith.constant 0 : i32
    %c0_i32_0 = arith.constant 0 : i32
    return %arg0, %c0_i32 : i32, i32
  }
}

</mosaic_0001>

<bundles_post_ra>
// kernel: tpu_custom_call.1
= control target key start
LH: loop header
LB: loop body
LE: loop exit
PB: predicated region body
PF: predicated region fallthrough
CT: control target
= control target key end

     0   :  { %6 = vsyncpa [#allocation3], 0  ;;  %s172_s0 = inlined_call_operand.hbm [shape: f32[2,1024], index: 0, kind: input, shape index: {}]   ;;  %s173_s1 = inlined_call_operand.hbm [shape: f32[2,1024], index: 1, kind: output, shape index: {}]  }
   0x1   :  { %7 = vsyncpa [#allocation4], 0  ;;  %s136_s6 = smov [#allocation2]   ;;  %s88_s10 = scalar_lea.hbm %s172_s0, 256 }
   0x2   :  { %s14_s7 = sshll.u32 %s136_s6, 4  ;;  %p89_p0 = scmp.ne.s32.totalorder %s172_s0, %s88_s10  ;;  %s15_s7 = int_to_ptr.vmem [resolvable:$true] %s14_s7 }
   0x3   :  { %p92_p1 = scmp.lt.u32.totalorder %s88_s10, %s172_s0 }
   0x5   :  { %p94_p2 = pnand %p92_p1, %p89_p0 }
   0x7   :  { %97 = shalt.err (!%p94_p2)
}
   0x8   :  { %s98_s15 = scalar_lea.vmem %s15_s7, 256  ;;  %p103_p4 = scmp.lt.s32.totalorder %s15_s7, %s15_s7 }
   0x9   :  { %p99_p3 = scmp.ne.s32.totalorder %s15_s7, %s98_s15  ;;  %p104_p5 = scmp.lt.s32.totalorder %s98_s15, %s98_s15 }
   0xb   :  { %p105_p6 = por %p104_p5, %p103_p4 }
   0xd   :  { %p106_p7 = pnand %p105_p6, %p99_p3 }
   0xf   :  { %109 = shalt.err (!%p106_p7)
}
  0x10   :  { %17 = dma.hbm_to_vmem [thread:$0]  %s172_s0, 256, %s15_s7, [#allocation3]  }
  0x11   :  { %132 = dma.done.wait [#allocation3], 256  }
  0x12   :  { %133 = vsyncadd [#allocation3], 4294967040  ;;  %v21_v0 = vld [vmem:[#allocation2] sm:$0xff]  ;;  %v22_v1 = vld [vmem:[#allocation2 + $0x8] sm:$0xff]  ;;  %s137_s0 = smov [#allocation5]  }
  0x13   :  { %v72_v2 = vmul.f32 -1.442695, %v21_v0  ;;  %v73_v3 = vmul.f32 -1.442695, %v22_v1  ;;  %s63_s18 = sshll.u32 %s137_s0, 4  ;;  %s64_s18 = int_to_ptr.vmem [resolvable:$true] %s63_s18 }
  0x14   :  { %s110_s19 = scalar_lea.vmem %s64_s18, 256  ;;  %p115_p9 = scmp.lt.s32.totalorder %s64_s18, %s64_s18 }
  0x15   :  { %76 = vpow2.f32 %v72_v2  ;;  %p111_p8 = scmp.ne.s32.totalorder %s64_s18, %s110_s19  ;;  %p116_p10 = scmp.lt.s32.totalorder %s110_s19, %s110_s19 }
  0x16   :  { %78 = vpow2.f32 %v73_v3 }
  0x17   :  { %p117_p11 = por %p116_p10, %p115_p9 }
  0x19   :  { %p118_p12 = pnand %p117_p11, %p111_p8 }
  0x1f   :  { %v77_v4 = vpop.eup %76 }
  0x20   :  { %v79_v5 = vpop.eup %78  ;;  %v29_v6 = vadd.f32 1.0, %v77_v4 }
  0x21   :  { %v30_v7 = vadd.f32 1.0, %v79_v5 }
  0x22   :  { %80 = vrcp.f32 %v29_v6 }
  0x23   :  { %82 = vrcp.f32 %v30_v7 }
  0x2c   :  { %v81_v8 = vpop.eup %80 }
  0x2d   :  { %v83_v9 = vpop.eup %82  ;;  %v35_v10 = vadd.f32 1.0, %v81_v8  ;;  %v38_v12 = vmul.f32 -0.5, %v81_v8  ;;  %v41_v15 = vand.u32 2147483647, %v81_v8 }
  0x2e   :  { %v44_v11 = vadd.f32 1.0, %v83_v9  ;;  %v47_v13 = vmul.f32 -0.5, %v83_v9  ;;  %v50_v17 = vand.u32 2147483647, %v83_v9 }
  0x2f   :  { %84 = vlog2.f32 %v35_v10  ;;  %v39_v14 = vadd.f32 1.0, %v38_v12  ;;  %vm42_vm0 = vcmp.lt.f32.partialorder %v41_v15, 0.0004427343 }
  0x30   :  { %86 = vlog2.f32 %v44_v11  ;;  %v48_v16 = vadd.f32 1.0, %v47_v13  ;;  %vm51_vm1 = vcmp.lt.f32.partialorder %v50_v17, 0.0004427343 }
  0x31   :  { %v40_v18 = vmul.f32 %v81_v8, %v39_v14 }
  0x32   :  { %v49_v20 = vmul.f32 %v83_v9, %v48_v16 }
  0x39   :  { %v85_v19 = vpop.eup %84 }
  0x3a   :  { %v87_v21 = vpop.eup %86  ;;  %v37_v22 = vmul.f32 0.6931472, %v85_v19 }
  0x3b   :  { %v46_v23 = vmul.f32 0.6931472, %v87_v21 }
  0x3c   :  { %v43_v24 = vsel %vm42_vm0, %v40_v18, %v37_v22 }
  0x3d   :  { %v53_v25 = vmul.f32 %v43_v24, %v21_v0  ;;  %v52_v26 = vsel %vm51_vm1, %v49_v20, %v46_v23 }
  0x3e   :  { %v54_v27 = vmul.f32 %v52_v26, %v22_v1 }
  0x3f   :  { %55 = vst [vmem:[#allocation5] sm:$0xff] %v53_v25 }
  0x40   :  { %56 = vst [vmem:[#allocation5 + $0x8] sm:$0xff] %v54_v27 }
  0x41   :  { %121 = shalt.err (!%p118_p12)
}
  0x42   :  { %s122_s22 = scalar_lea.hbm %s173_s1, 256 }
  0x43   :  { %p123_p13 = scmp.ne.s32.totalorder %s173_s1, %s122_s22  ;;  %p126_p0 = scmp.lt.u32.totalorder %s122_s22, %s173_s1 }
  0x45   :  { %p128_p1 = pnand %p126_p0, %p123_p13 }
  0x47   :  { %131 = shalt.err (!%p128_p1)
}
  0x48   :  { %66 = dma.vmem_to_hbm [thread:$0]  %s64_s18, 256, %s173_s1, [#allocation4]  }
  0x49   :  { %134 = dma.done.wait [#allocation4], 256  }
  0x4a   :  { %135 = vsyncadd [#allocation4], 4294967040 }
  0x4b   :  { %70 = vsyncpa [#allocation3], 1 }
  0x4c   :  { %71 = vsyncpa [#allocation4], 1 }

</bundles_post_ra>
